<compile_context>
chip_gen: v7x
topology: tpu7x:2x2x1
jax: 0.10.0
libtpu: 0.0.40
codegen_flags: <defaults>
</compile_context>

<pallas_src>
import functools

import jax
import jax.numpy as jnp
from jax.experimental import pallas as pl
from jax.experimental.pallas import tpu as pltpu


def _attention_kernel(x_ref, w1t_ref, b1_ref, w2_ref, ctx_ref, attw_ref,
                      *, matmul_dtype):
    # x_ref:   (Bt, S, H) f32  -- a block of Bt batch elements
    # w1t_ref: (H, H)     matmul_dtype, W1 transposed (x @ w1t == x @ W1^T)
    # b1_ref:  (1, H)     f32
    # w2_ref:  (1, H)     f32  -- the single row of the score Linear
    # ctx_ref: (Bt, H)    f32
    # attw_ref:(Bt, S)    f32  -- lane-dense; reshaped to (B, S, 1) in wrapper
    Bt, S, H = x_ref.shape
    x = x_ref[...]                                          # (Bt, S, H) f32

    # hidden = tanh(x @ W1^T + b1)
    # Flatten batch*seq so the MXU sees one (Bt*S, H) x (H, H) matmul instead
    # of Bt tiny ones. Cast operands to bf16 for the MXU, accumulate in f32.
    x2 = x.reshape(Bt * S, H).astype(matmul_dtype)
    h = jnp.tanh(
        jnp.dot(x2, w1t_ref[...], preferred_element_type=jnp.float32)
        + b1_ref[...]
    )                                                       # (Bt*S, H) f32
    h3 = h.reshape(Bt, S, H)

    # scores = hidden @ W2^T : N=1, so avoid the MXU -- VPU mul + lane reduce.
    # b2 is omitted: softmax is shift-invariant, so it cannot change attw/ctx.
    scores = jnp.sum(h3 * w2_ref[...].reshape(1, 1, H), axis=-1)   # (Bt, S)

    # softmax over the sequence axis (lane-dense layout).
    m = jnp.max(scores, axis=-1, keepdims=True)             # (Bt, 1)
    e = jnp.exp(scores - m)                                 # (Bt, S)
    attw = e / jnp.sum(e, axis=-1, keepdims=True)           # (Bt, S)

    # context = sum_s attw[:, s] * x[:, s, :]
    # TODO(synk): for large S, route this S-contraction through the MXU
    # (batched dot_general) instead of VPU broadcast + sublane reduce.
    ctx = jnp.sum(attw[:, :, None] * x, axis=1)             # (Bt, H) f32

    ctx_ref[...] = ctx.astype(ctx_ref.dtype)
    attw_ref[...] = attw.astype(attw_ref.dtype)


def attention_layer(lstm_output, w1, b1, w2, b2=None, *,
                    block_b=8, matmul_dtype=jnp.bfloat16):
    """Pallas forward of AttentionLayer.

    Args:
      lstm_output: (B, S, H) float32
      w1: (H, H)  PyTorch Linear(H, H).weight  (out, in)
      b1: (H,)
      w2: (1, H)  PyTorch Linear(H, 1).weight
      b2: (1,)    unused -- softmax over seq is shift-invariant, so the scalar
                  bias cannot change attention weights or context.
      block_b: max batch elements per grid step.
      matmul_dtype: dtype of the dominant (Bt*S, H) x (H, H) matmul operands.
    Returns:
      context:            (B, H)
      attention_weights:  (B, S, 1)
    """
    del b2  # provably redundant (softmax shift invariance)
    B, S, H = lstm_output.shape

    # Batch tile: amortize per-grid-step overhead and fill the MXU, but keep
    # the (double-buffered) x tile well inside VMEM (sized for v7x's 64 MiB).
    vmem_budget = 16 * 1024 * 1024
    per_batch_bytes = 4 * S * H * 4        # x tile (2 bufs) + f32 temps, rough
    bt_cap = max(1, vmem_budget // max(per_batch_bytes, 1))
    Bt = max(1, min(B, block_b, bt_cap))
    if Bt < B:
        # Keep partial batch blocks sublane-aligned for the 2-D outputs.
        Bt = max(8, (Bt // 8) * 8)
    grid = (pl.cdiv(B, Bt),)

    w1t = w1.T.astype(matmul_dtype)                 # (H, H)
    b1r = b1.reshape(1, H).astype(jnp.float32)      # (1, H)
    w2r = w2.reshape(1, H).astype(jnp.float32)      # (1, H)

    kernel = functools.partial(_attention_kernel, matmul_dtype=matmul_dtype)

    out_shapes = (
        jax.ShapeDtypeStruct((B, H), lstm_output.dtype),
        jax.ShapeDtypeStruct((B, S), lstm_output.dtype),   # lane-dense attw
    )
    ctx, attw2d = pl.pallas_call(
        kernel,
        out_shape=out_shapes,
        grid_spec=pltpu.PrefetchScalarGridSpec(
            num_scalar_prefetch=0,
            grid=grid,
            in_specs=[
                pl.BlockSpec((Bt, S, H), lambda b: (b, 0, 0)),
                pl.BlockSpec((H, H), lambda b: (0, 0)),
                pl.BlockSpec((1, H), lambda b: (0, 0)),
                pl.BlockSpec((1, H), lambda b: (0, 0)),
            ],
            out_specs=[
                pl.BlockSpec((Bt, H), lambda b: (b, 0)),
                pl.BlockSpec((Bt, S), lambda b: (b, 0)),
            ],
        ),
        compiler_params=pltpu.CompilerParams(
            dimension_semantics=("parallel",),
            vmem_limit_bytes=32 * 1024 * 1024,
        ),
    )(lstm_output, w1t, b1r, w2r)

    # Restore the PyTorch module's (B, S, 1) attention-weights shape.
    return ctx, attw2d.reshape(B, S, 1)


def _reference(lstm_output, w1, b1, w2, b2):
    # Plain-JAX faithful port of the PyTorch forward, for sanity checking.
    h = jnp.tanh(jnp.einsum("bsh,oh->bso", lstm_output, w1) + b1)
    scores = jnp.einsum("bsh,oh->bso", h, w2) + b2            # (B, S, 1)
    attw = jax.nn.softmax(scores, axis=1)
    ctx = jnp.sum(attw * lstm_output, axis=1)
    return ctx, attw


if __name__ == "__main__":
    B, S, H = 2, 8, 32
    key = jax.random.PRNGKey(0)
    k_x, k_w1, k_b1, k_w2, k_b2 = jax.random.split(key, 5)

    lstm_output = jax.random.normal(k_x, (B, S, H), dtype=jnp.float32)
    # Deterministic "PyTorch-like" parameter init (uniform in +-1/sqrt(fan_in)).
    bound1 = 1.0 / (H ** 0.5)
    w1 = jax.random.uniform(k_w1, (H, H), jnp.float32, -bound1, bound1)
    b1 = jax.random.uniform(k_b1, (H,), jnp.float32, -bound1, bound1)
    w2 = jax.random.uniform(k_w2, (1, H), jnp.float32, -bound1, bound1)
    b2 = jax.random.uniform(k_b2, (1,), jnp.float32, -bound1, bound1)

    ctx_ref, attw_ref = _reference(lstm_output, w1, b1, w2, b2)

    # Full-precision path: f32 matmul, tight(ish) tolerance -> structural check.
    ctx32, attw32 = attention_layer(lstm_output, w1, b1, w2, b2,
                                    matmul_dtype=jnp.float32)
    jax.block_until_ready((ctx32, attw32))
    assert ctx32.shape == (B, H) and attw32.shape == (B, S, 1)
    assert jnp.allclose(ctx32, ctx_ref, atol=1e-3, rtol=1e-3)
    assert jnp.allclose(attw32, attw_ref, atol=1e-3, rtol=1e-3)

    # Default performance path: bf16 MXU matmul, f32 accumulation / softmax.
    ctx_bf, attw_bf = attention_layer(lstm_output, w1, b1, w2, b2)
    jax.block_until_ready((ctx_bf, attw_bf))
    assert ctx_bf.shape == (B, H) and attw_bf.shape == (B, S, 1)
    assert jnp.allclose(ctx_bf, ctx_ref, atol=2e-2, rtol=2e-2)
    assert jnp.allclose(attw_bf, attw_ref, atol=2e-2, rtol=2e-2)
    assert jnp.allclose(jnp.sum(attw_bf, axis=1), 1.0, atol=1e-5)

    print("KERNEL_OK")
</pallas_src>

<mosaic_0001>
module attributes {stable_mosaic.version = 11 : i64} {
  func.func @_attention_kernel(%arg0: i32, %arg1: memref<2x8x32xf32, #tpu.memory_space<vmem>>, %arg2: memref<32x32xf32, #tpu.memory_space<vmem>>, %arg3: memref<1x32xf32, #tpu.memory_space<vmem>>, %arg4: memref<1x32xf32, #tpu.memory_space<vmem>>, %arg5: memref<2x32xf32, #tpu.memory_space<vmem>>, %arg6: memref<2x8xf32, #tpu.memory_space<vmem>>) attributes {dimension_semantics = [#tpu.dimension_semantics<parallel>], iteration_bounds = array<i64: 1>, scalar_prefetch = 0 : i64, scratch_operands = 0 : i64, tpu.core_type = #tpu.core_type<tc>, window_params = [{transform_indices = @transform_0, window_bounds = array<i64: 2, 8, 32>}, {pipeline_mode = #tpu.pipeline_mode<synchronous>, transform_indices = @transform_1, window_bounds = array<i64: 32, 32>}, {pipeline_mode = #tpu.pipeline_mode<synchronous>, transform_indices = @transform_2, window_bounds = array<i64: 1, 32>}, {pipeline_mode = #tpu.pipeline_mode<synchronous>, transform_indices = @transform_3, window_bounds = array<i64: 1, 32>}, {transform_indices = @transform_4, window_bounds = array<i64: 2, 32>}, {transform_indices = @transform_5, window_bounds = array<i64: 2, 8>}]} {
    %c0 = arith.constant 0 : index
    %c0_0 = arith.constant 0 : index
    %c0_1 = arith.constant 0 : index
    %0 = vector.load %arg1[%c0, %c0_0, %c0_1] : memref<2x8x32xf32, #tpu.memory_space<vmem>>, vector<2x8x32xf32>
    %1 = vector.shape_cast %0 : vector<2x8x32xf32> to vector<16x32xf32>
    %c0_2 = arith.constant 0 : index
    %c0_3 = arith.constant 0 : index
    %2 = vector.load %arg2[%c0_2, %c0_3] : memref<32x32xf32, #tpu.memory_space<vmem>>, vector<32x32xf32>
    %cst = arith.constant dense<0.000000e+00> : vector<16x32xf32>
    %3 = tpu.matmul %1, %2, %cst {dimension_numbers = #tpu.dot_dimension_numbers<[1], [0], [0], [1], [0, 0, 1, 1], [], []>} : vector<16x32xf32>, vector<32x32xf32>, vector<16x32xf32> -> vector<16x32xf32>
    %c0_4 = arith.constant 0 : index
    %c0_5 = arith.constant 0 : index
    %4 = vector.load %arg3[%c0_4, %c0_5] : memref<1x32xf32, #tpu.memory_space<vmem>>, vector<1x32xf32>
    %5 = vector.broadcast %4 : vector<1x32xf32> to vector<16x32xf32>
    %6 = arith.addf %3, %5 : vector<16x32xf32>
    %7 = math.tanh %6 : vector<16x32xf32>
    %8 = vector.shape_cast %7 : vector<16x32xf32> to vector<2x8x32xf32>
    %c0_6 = arith.constant 0 : index
    %c0_7 = arith.constant 0 : index
    %9 = vector.load %arg4[%c0_6, %c0_7] : memref<1x32xf32, #tpu.memory_space<vmem>>, vector<1x32xf32>
    %10 = vector.shape_cast %9 : vector<1x32xf32> to vector<1x1x32xf32>
    %11 = vector.broadcast %10 : vector<1x1x32xf32> to vector<2x8x32xf32>
    %12 = arith.mulf %8, %11 : vector<2x8x32xf32>
    %cst_8 = arith.constant dense<0.000000e+00> : vector<2x8xf32>
    %13 = vector.multi_reduction <add>, %12, %cst_8 [2] : vector<2x8x32xf32> to vector<2x8xf32>
    %cst_9 = arith.constant dense<0xFF800000> : vector<2xf32>
    %14 = vector.multi_reduction <maximumf>, %13, %cst_9 [1] : vector<2x8xf32> to vector<2xf32>
    %15 = vector.shape_cast %14 : vector<2xf32> to vector<2x1xf32>
    %16 = vector.broadcast %15 : vector<2x1xf32> to vector<2x8xf32>
    %17 = arith.subf %13, %16 : vector<2x8xf32>
    %18 = math.exp %17 : vector<2x8xf32>
    %cst_10 = arith.constant dense<0.000000e+00> : vector<2xf32>
    %19 = vector.multi_reduction <add>, %18, %cst_10 [1] : vector<2x8xf32> to vector<2xf32>
    %20 = vector.shape_cast %19 : vector<2xf32> to vector<2x1xf32>
    %21 = vector.broadcast %20 : vector<2x1xf32> to vector<2x8xf32>
    %22 = arith.divf %18, %21 : vector<2x8xf32>
    %23 = vector.shape_cast %22 : vector<2x8xf32> to vector<2x8x1xf32>
    %24 = vector.broadcast %23 : vector<2x8x1xf32> to vector<2x8x32xf32>
    %25 = arith.mulf %24, %0 : vector<2x8x32xf32>
    %cst_11 = arith.constant dense<0.000000e+00> : vector<2x32xf32>
    %26 = vector.multi_reduction <add>, %25, %cst_11 [1] : vector<2x8x32xf32> to vector<2x32xf32>
    %c0_12 = arith.constant 0 : index
    %c0_13 = arith.constant 0 : index
    %27 = vector.load %arg5[%c0_12, %c0_13] : memref<2x32xf32, #tpu.memory_space<vmem>>, vector<2x32xf32>
    tpu.vector_store %arg5[%c0_12, %c0_13], %26 {strides = array<i32>} : memref<2x32xf32, #tpu.memory_space<vmem>>, vector<2x32xf32>,
    %c0_14 = arith.constant 0 : index
    %c0_15 = arith.constant 0 : index
    %28 = vector.load %arg6[%c0_14, %c0_15] : memref<2x8xf32, #tpu.memory_space<vmem>>, vector<2x8xf32>
    tpu.vector_store %arg6[%c0_14, %c0_15], %22 {strides = array<i32>} : memref<2x8xf32, #tpu.memory_space<vmem>>, vector<2x8xf32>,
    return
  }
  func.func @transform_0(%arg0: i32) -> (i32, i32, i32) {
    %c0_i32 = arith.constant 0 : i32
    %c0_i32_0 = arith.constant 0 : i32
    %c0_i32_1 = arith.constant 0 : i32
    return %arg0, %c0_i32, %c0_i32_0 : i32, i32, i32
  }
  func.func @transform_1(%arg0: i32) -> (i32, i32) {
    %c0_i32 = arith.constant 0 : i32
    %c0_i32_0 = arith.constant 0 : i32
    %c0_i32_1 = arith.constant 0 : i32
    return %c0_i32, %c0_i32_0 : i32, i32
  }
  func.func @transform_2(%arg0: i32) -> (i32, i32) {
    %c0_i32 = arith.constant 0 : i32
    %c0_i32_0 = arith.constant 0 : i32
    %c0_i32_1 = arith.constant 0 : i32
    return %c0_i32, %c0_i32_0 : i32, i32
  }
  func.func @transform_3(%arg0: i32) -> (i32, i32) {
    %c0_i32 = arith.constant 0 : i32
    %c0_i32_0 = arith.constant 0 : i32
    %c0_i32_1 = arith.constant 0 : i32
    return %c0_i32, %c0_i32_0 : i32, i32
  }
  func.func @transform_4(%arg0: i32) -> (i32, i32) {
    %c0_i32 = arith.constant 0 : i32
    %c0_i32_0 = arith.constant 0 : i32
    return %arg0, %c0_i32 : i32, i32
  }
  func.func @transform_5(%arg0: i32) -> (i32, i32) {
    %c0_i32 = arith.constant 0 : i32
    %c0_i32_0 = arith.constant 0 : i32
    return %arg0, %c0_i32 : i32, i32
  }
}

</mosaic_0001>

<bundles_post_ra>
// kernel: tpu_custom_call.1
= control target key start
LH: loop header
LB: loop body
LE: loop exit
PB: predicated region body
PF: predicated region fallthrough
CT: control target
= control target key end

     0   :  { %11 = vsyncpa [#allocation3], 0  ;;  %s564_s0 = inlined_call_operand.hbm [shape: f32[2,8,32], index: 0, kind: input, shape index: {}]   ;;  %s565_s1 = inlined_call_operand.hbm [shape: f32[32,32], index: 1, kind: input, shape index: {}]   ;;  %s566_s2 = inlined_call_operand.vmem [shape: f32[1,32], index: 2, kind: input, shape index: {}]   ;;  %s567_s3 = inlined_call_operand.vmem [shape: f32[1,32], index: 3, kind: input, shape index: {}]   ;;  %s568_s4 = inlined_call_operand.hbm [shape: f32[2,32], index: 4, kind: output, shape index: {0}]   ;;  %s569_s5 = inlined_call_operand.hbm [shape: f32[2,8], index: 5, kind: output, shape index: {1}]  }
   0x1   :  { %12 = vsyncpa [#allocation6], 0 }
   0x2   :  { %13 = vsyncpa [#allocation4], 0 }
   0x3   :  { %14 = vsyncpa [#allocation9], 0  ;;  %s452_s18 = smov [#allocation2]   ;;  %s356_s22 = scalar_lea.hbm %s564_s0, 256 }
   0x4   :  { %s20_s19 = sshll.u32 %s452_s18, 4  ;;  %p357_p0 = scmp.ne.s32.totalorder %s564_s0, %s356_s22  ;;  %s21_s19 = int_to_ptr.vmem [resolvable:$true] %s20_s19 }
   0x5   :  { %p360_p1 = scmp.lt.u32.totalorder %s356_s22, %s564_s0 }
   0x7   :  { %p362_p2 = pnand %p360_p1, %p357_p0 }
   0x9   :  { %365 = shalt.err (!%p362_p2)
}
   0xa   :  { %s366_s27 = scalar_lea.vmem %s21_s19, 256  ;;  %p371_p4 = scmp.lt.s32.totalorder %s21_s19, %s21_s19 }
   0xb   :  { %p367_p3 = scmp.ne.s32.totalorder %s21_s19, %s366_s27  ;;  %p372_p5 = scmp.lt.s32.totalorder %s366_s27, %s366_s27 }
   0xd   :  { %p373_p6 = por %p372_p5, %p371_p4 }
   0xf   :  { %p374_p7 = pnand %p373_p6, %p367_p3 }
  0x11   :  { %377 = shalt.err (!%p374_p7)
}
  0x12   :  { %s453_s28 = smov 128   ;;  %s454_s29 = smov 8  }
  0x13   :  { %26 = dma.hbm_to_vmem [thread:$0]  %s564_s0, 256, %s21_s19, [#allocation3], %s453_s28, %s453_s28, %s454_s29  }
  0x14   :  { %s455_s7 = smov [#allocation5]   ;;  %s378_s11 = scalar_lea.hbm %s565_s1, 512 }
  0x15   :  { %s32_s8 = sshll.u32 %s455_s7, 4  ;;  %p379_p8 = scmp.ne.s32.totalorder %s565_s1, %s378_s11  ;;  %s33_s8 = int_to_ptr.vmem [resolvable:$true] %s32_s8 }
  0x16   :  { %p382_p9 = scmp.lt.u32.totalorder %s378_s11, %s565_s1 }
  0x18   :  { %p384_p10 = pnand %p382_p9, %p379_p8 }
  0x1a   :  { %387 = shalt.err (!%p384_p10)
}
  0x1b   :  { %s388_s16 = scalar_lea.vmem %s33_s8, 512  ;;  %p393_p12 = scmp.lt.s32.totalorder %s33_s8, %s33_s8 }
  0x1c   :  { %p389_p11 = scmp.ne.s32.totalorder %s33_s8, %s388_s16  ;;  %p394_p13 = scmp.lt.s32.totalorder %s388_s16, %s388_s16 }
  0x1e   :  { %p395_p0 = por %p394_p13, %p393_p12 }
  0x20   :  { %p396_p1 = pnand %p395_p0, %p389_p11 }
  0x22   :  { %399 = shalt.err (!%p396_p1)
}
  0x23   :  { %38 = dma.hbm_to_vmem [thread:$0]  %s565_s1, 512, %s33_s8, [#allocation6], %s453_s28, %s453_s28, %s454_s29  }
  0x24   :  { %444 = dma.done.wait [#allocation3], 256  }
  0x25   :  { %445 = vsyncadd [#allocation3], 4294967040 }
  0x26   :  { %446 = dma.done.wait [#allocation6], 512  }
  0x27   :  { %447 = vsyncadd [#allocation6], 4294966784  ;;  %vm62_vm0 = vcmask 261120   ;;  %v51_v0 = vld [vmem:[#allocation5] sm:$0xff]  ;;  %v52_v1 = vld [vmem:[#allocation5 + $0x8] sm:$0xff]  ;;  %v163_v20 = vlaneseq  ;;  %vm173_vm1 = vcmask 1041409  }
  0x28   :  { %v53_v2 = vld [vmem:[#allocation5 + $0x10] sm:$0xff]  ;;  %v327_v3 = vpack.c.bf16 %v52_v1, %v51_v0  ;;  %v54_v4 = vld [vmem:[#allocation5 + $0x18] sm:$0xff]  ;;  %vm176_vm2 = vcmask 58368   ;;  %v456_v30 = vmov 0  }
  0x29   :  { %v513_v5 = vld [vmem:[#allocation2] sm:$0xff]  ;;  %v331_v6 = vpack.c.bf16 %v54_v4, %v53_v2  ;;  %v517_v7 = vld [vmem:[#allocation2 + $0x8] sm:$0xff]  ;;  %v164_v21 = vand.u32 127, %v163_v20  ;;  %v166_v22 = vshrl.u32 %v163_v20, 7  ;;  %343 = vset.pattern.permute.xlu0 %v456_v30  ;;  %342 = vset.pattern.permute.xlu1 %v456_v30 }
  0x2a   :  { %324 = vmatprep.mubr.msk.f32.mxu0 %vm62_vm0, %v513_v5  ;;  %328 = vmatprep.subr.bf16.mxu0 %v327_v3  ;;  %v306_v8 = vld [vmem:[%s566_s2] ss:$0 sm:$0xff]  ;;  %s457_s2 = smov [#allocation8]  }
  0x2b   :  { %330 = vmatpush3.bf16.msra.mxu0 %v327_v3  ;;  %v309_v13 = vld [vmem:[%s567_s3] ss:$0 sm:$0xff]  ;;  %v167_v24 = vsub.s32 %v164_v21, %v166_v22  ;;  %v183_v31 = vsub.s32 0, %v166_v22  ;;  %v187_v32 = vsub.s32 1, %v166_v22  ;;  %s292_s3 = sshll.u32 %s457_s2, 4  ;;  %s293_s3 = int_to_ptr.vmem [resolvable:$true] %s292_s3 }
  0x2c   :  { %332 = vmatprep.subr.bf16.mxu0 %v331_v6  ;;  %s400_s21 = scalar_lea.vmem %s293_s3, 32  ;;  %p405_p3 = scmp.lt.s32.totalorder %s293_s3, %s293_s3 }
  0x2d   :  { %p401_p2 = scmp.ne.s32.totalorder %s293_s3, %s400_s21  ;;  %p406_p4 = scmp.lt.s32.totalorder %s400_s21, %s400_s21 }
  0x2f   :  { %334 = vmatpush3.bf16.msra.mxu0 %v331_v6  ;;  %p407_p5 = por %p406_p4, %p405_p3 }
  0x31   :  { %p408_p6 = pnand %p407_p5, %p401_p2 }
  0x32   :  { %325 = vmatmul.mubr.msk.f32.vlgmr.msra.gmra.mrb[0].mxu0 %vm62_vm0, %v517_v7 }
 0x105   :  { %v326_v9 = vpop.f32.mrb[0].mxu0 }
 0x106   :  { %v141_v10 = vadd.f32 %v326_v9, %v306_v8  ;;  %v135_v11 = vpop.f32.mrb[1].mxu0 }
 0x107   :  { %v136_v12 = vadd.f32 %v306_v8, %v135_v11 }
 0x108   :  { %344 = vtanh.f32 %v141_v10 }
 0x109   :  { %346 = vtanh.f32 %v136_v12 }
 0x112   :  { %v345_v14 = vpop.eup %344 }
 0x113   :  { %v347_v15 = vpop.eup %346  ;;  %v154_v18 = vmul.f32 %v345_v14, %v309_v13 }
 0x114   :  { %v153_v16 = vmul.f32 %v347_v15, %v309_v13 }
 0x115   :  { %v158_v19 = vsel %vm62_vm0, %v154_v18, 0.0 }
 0x116   :  { %v155_v17 = vsel %vm62_vm0, %v153_v16, 0.0 }
 0x117   :  { %156 = vadd.xlane.f32.xlu0 %v155_v17 }
 0x11b   :  { %159 = vadd.xlane.f32.xlu0 %v158_v19 }
 0x1a4   :  { %v157_v23 = vpop.xlane.xlu0 %156 }
 0x1a5   :  { %v168_v26 = vrot.slane %v157_v23, %v167_v24 }
 0x1a8   :  { %v160_v25 = vpop.xlane.xlu0 %159 }
 0x1a9   :  { %v172_v27 = vrot.slane %v160_v25, %v167_v24 }
 0x1ab   :  { %v174_v28 = vsel %vm173_vm1, %v172_v27, %v168_v26 }
 0x1ac   :  { %v177_v29 = vsel %vm176_vm2, %v174_v28, -inf }
 0x1ad   :  { %178 = vmax.xlane.f32.xlu1 %v177_v29 }
 0x23a   :  { %v179_v33 = vpop.xlane.xlu1 %178 }
 0x23b   :  { %v184_v34 = vrot.slane %v179_v33, %v183_v31  ;;  %v188_v35 = vrot.slane %v179_v33, %v187_v32 }
 0x23d   :  { %v191_v36 = vsub.f32 %v157_v23, %v184_v34  ;;  %v192_v37 = vsub.f32 %v160_v25, %v188_v35 }
 0x23f   :  { %v193_v38 = vmul.f32 1.442695, %v191_v36  ;;  %v195_v39 = vmul.f32 1.442695, %v192_v37 }
 0x241   :  { %348 = vpow2.f32 %v193_v38 }
 0x242   :  { %350 = vpow2.f32 %v195_v39 }
 0x24b   :  { %v349_v40 = vpop.eup %348 }
 0x24c   :  { %v351_v41 = vpop.eup %350  ;;  %200 = vperm.xlu1 %342, %v349_v40  }
 0x24d   :  { %203 = vperm.xlu0 %343, %v351_v41  }
 0x2cb   :  { %v201_v42 = vpop.permute.xlu1 %200 }
 0x2cc   :  { %v204_v43 = vpop.permute.xlu0 %203  ;;  %v208_v44 = vrot.slane %v201_v42, %v167_v24 }
 0x2cd   :  { %v212_v45 = vrot.slane %v204_v43, %v167_v24 }
 0x2cf   :  { %v213_v46 = vsel %vm173_vm1, %v212_v45, %v208_v44 }
 0x2d0   :  { %v215_v47 = vsel %vm176_vm2, %v213_v46, 0.0 }
 0x2d1   :  { %216 = vadd.xlane.f32.xlu1 %v215_v47 }
 0x35e   :  { %v217_v48 = vpop.xlane.xlu1 %216 }
 0x35f   :  { %v222_v49 = vrot.slane %v217_v48, %v183_v31  ;;  %v226_v50 = vrot.slane %v217_v48, %v187_v32 }
 0x361   :  { %352 = vrcp.f32 %v222_v49 }
 0x362   :  { %354 = vrcp.f32 %v226_v50 }
 0x36b   :  { %v353_v51 = vpop.eup %352 }
 0x36c   :  { %v230_v52 = vmul.f32 %v353_v51, %v349_v40  ;;  %v355_v53 = vpop.eup %354 }
 0x36d   :  { %v232_v54 = vmul.f32 %v355_v53, %v351_v41 }
 0x36e   :  { %235 = vperm.xlu0 %343, %v230_v52  }
 0x372   :  { %240 = vperm.xlu0 %343, %v232_v54  }
 0x3ed   :  { %v236_v55 = vpop.permute.xlu0 %235 }
 0x3ee   :  { %v243_v56 = vmul.f32 %v236_v55, %v513_v5  ;;  %v268_v60 = vrot.slane %v236_v55, %v167_v24 }
 0x3f0   :  { %v245_v57 = vsel %vm62_vm0, %v243_v56, 0.0 }
 0x3f1   :  { %v246_v58 = vrot.slane %v245_v57, 4  ;;  %v241_v59 = vpop.permute.xlu0 %240 }
 0x3f2   :  { %v244_v61 = vmul.f32 %v241_v59, %v517_v7  ;;  %v272_v62 = vrot.slane %v241_v59, %v167_v24 }
 0x3f3   :  { %v247_v63 = vadd.f32 %v246_v58, %v245_v57 }
 0x3f4   :  { %v252_v0 = vsel %vm62_vm0, %v244_v61, 0.0  ;;  %v273_v1 = vsel %vm173_vm1, %v272_v62, %v268_v60 }
 0x3f5   :  { %v248_v2 = vrot.slane %v247_v63, 2  ;;  %v253_v3 = vrot.slane %v252_v0, 4  ;;  %275 = vst.msk [vmem:[#allocation8] sm:$0x3] %vm176_vm2, %v273_v1 }
 0x3f6   :  { %411 = shalt.err (!%p408_p6)
}
 0x3f7   :  { %s412_s24 = scalar_lea.hbm %s569_s5, 32 }
 0x3f8   :  { %p413_p7 = scmp.ne.s32.totalorder %s569_s5, %s412_s24  ;;  %p416_p8 = scmp.lt.u32.totalorder %s412_s24, %s569_s5 }
 0x3fa   :  { %p418_p9 = pnand %p416_p8, %p413_p7 }
 0x3fc   :  { %421 = shalt.err (!%p418_p9)
}
 0x3fd   :  { %295 = dma.vmem_to_hbm [thread:$0]  %s293_s3, 32, %s569_s5, [#allocation9]   ;;  %v249_v4 = vadd.f32 %v248_v2, %v247_v63  ;;  %v254_v5 = vadd.f32 %v253_v3, %v252_v0  ;;  %vm263_vm3 = vcmask 254976  }
 0x3fe   :  { %s458_s6 = smov [#allocation7]  }
 0x3ff   :  { %v255_v6 = vrot.slane %v254_v5, 2  ;;  %v250_v7 = vrot.slane %v249_v4, 1  ;;  %s282_s7 = sshll.u32 %s458_s6, 4  ;;  %s283_s7 = int_to_ptr.vmem [resolvable:$true] %s282_s7 }
 0x400   :  { %s422_s8 = scalar_lea.vmem %s283_s7, 32  ;;  %p427_p11 = scmp.lt.s32.totalorder %s283_s7, %s283_s7 }
 0x401   :  { %v256_v8 = vadd.f32 %v255_v6, %v254_v5  ;;  %v251_v11 = vadd.f32 %v250_v7, %v249_v4  ;;  %p423_p10 = scmp.ne.s32.totalorder %s283_s7, %s422_s8  ;;  %p428_p12 = scmp.lt.s32.totalorder %s422_s8, %s422_s8 }
 0x403   :  { %v257_v9 = vrot.slane %v256_v8, 1  ;;  %p429_p13 = por %p428_p12, %p427_p11 }
 0x405   :  { %v258_v10 = vadd.f32 %v257_v9, %v256_v8  ;;  %p430_p0 = pnand %p429_p13, %p423_p10 }
 0x407   :  { %v261_v12 = vsel %vm173_vm1, %v258_v10, %v251_v11 }
 0x408   :  { %264 = vst.msk [vmem:[#allocation7] sm:$0x3] %vm263_vm3, %v261_v12 }
 0x409   :  { %433 = shalt.err (!%p430_p0)
}
 0x40a   :  { %s434_s10 = scalar_lea.hbm %s568_s4, 32 }
 0x40b   :  { %p435_p1 = scmp.ne.s32.totalorder %s568_s4, %s434_s10  ;;  %p438_p2 = scmp.lt.u32.totalorder %s434_s10, %s568_s4 }
 0x40d   :  { %p440_p3 = pnand %p438_p2, %p435_p1 }
 0x40f   :  { %443 = shalt.err (!%p440_p3)
}
 0x410   :  { %285 = dma.vmem_to_hbm [thread:$0]  %s283_s7, 32, %s568_s4, [#allocation4]  }
 0x411   :  { %448 = dma.done.wait [#allocation4], 32  }
 0x412   :  { %449 = vsyncadd [#allocation4], 4294967264 }
 0x413   :  { %450 = dma.done.wait [#allocation9], 32  }
 0x414   :  { %451 = vsyncadd [#allocation9], 4294967264 }
 0x415   :  { %302 = vsyncpa [#allocation3], 1 }
 0x416   :  { %303 = vsyncpa [#allocation6], 1 }
 0x417   :  { %304 = vsyncpa [#allocation4], 1 }
 0x418   :  { %305 = vsyncpa [#allocation9], 1 }

</bundles_post_ra>
